<compile_context>
chip_gen: v6e
topology: v6e:2x2x1
jax: 0.10.0
libtpu: 0.0.40
codegen_flags: <defaults>
</compile_context>

<pallas_src>
import functools
import math

import numpy as np
import jax
import jax.numpy as jnp
from jax.experimental import pallas as pl
from jax.experimental.pallas import tpu as pltpu

VMEM_LIMIT = 48 * 1024 * 1024          # safe on v5e/v6e (128 MiB) and v7x (64 MiB)
ACT_DTYPE = jnp.bfloat16               # HBM activation dtype (f32 math in-kernel)


def _cp(*sems):
    return pltpu.CompilerParams(dimension_semantics=tuple(sems),
                                vmem_limit_bytes=VMEM_LIMIT)


def _pick_tile(dim, candidates):
    for c in candidates:
        if dim % c == 0:
            return c
    return dim


def _gelu(x):
    # exact (erf-based) GELU, matching torch.nn.GELU() / F.gelu defaults
    return 0.5 * x * (1.0 + jax.lax.erf(x * 0.7071067811865476))


# ----------------------------------------------------------------------------
# Generic matmul with fused LayerNorm prologue / bias / residual / GELU epilogue
# ----------------------------------------------------------------------------
def _matmul_kernel(*refs, ln, has_res, gelu, eps=1e-5):
    o_ref = refs[-1]
    a_ref, b_ref, bias_ref = refs[0], refs[1], refs[2]
    idx = 3
    if ln:
        g_ref, beta_ref = refs[idx], refs[idx + 1]
        idx += 2
    if has_res:
        res_ref = refs[idx]
        idx += 1

    a = a_ref[...]
    if ln:
        af = a.astype(jnp.float32)
        mu = jnp.mean(af, axis=-1, keepdims=True)
        var = jnp.mean(jnp.square(af - mu), axis=-1, keepdims=True)
        af = (af - mu) * jax.lax.rsqrt(var + eps) * g_ref[...] + beta_ref[...]
        a = af.astype(jnp.bfloat16)
    else:
        a = a.astype(jnp.bfloat16)
    b = b_ref[...].astype(jnp.bfloat16)

    acc = jnp.dot(a, b, preferred_element_type=jnp.float32) + bias_ref[...]
    if has_res:
        acc = acc + res_ref[...].astype(jnp.float32)
    if gelu:
        acc = _gelu(acc)
    o_ref[...] = acc.astype(o_ref.dtype)


def pallas_matmul(a, b, bias=None, *, ln=None, residual=None, gelu=False,
                  out_dtype=ACT_DTYPE):
    """(M, K) @ (K, N) [+bias] [+residual] [->GELU]; K resident, bf16 on the MXU."""
    M, K = a.shape
    Kb, N = b.shape
    assert K == Kb
    if bias is None:
        bias = jnp.zeros((N,), jnp.float32)
    bias2d = bias.reshape(1, N).astype(jnp.float32)

    tm = _pick_tile(M, (2048, 1024, 512, 256, 128, 64, 32, 16, 8))
    tn = _pick_tile(N, (2048, 1024, 512, 384, 256, 128))

    arrays = [a, b, bias2d]
    in_specs = [
        pl.BlockSpec((tm, K), lambda i, j: (i, 0)),
        pl.BlockSpec((K, tn), lambda i, j: (0, j)),
        pl.BlockSpec((1, tn), lambda i, j: (0, j)),
    ]
    has_ln = ln is not None
    if has_ln:
        g, bt = ln
        arrays += [g.reshape(1, K).astype(jnp.float32),
                   bt.reshape(1, K).astype(jnp.float32)]
        in_specs += [pl.BlockSpec((1, K), lambda i, j: (0, 0)),
                     pl.BlockSpec((1, K), lambda i, j: (0, 0))]
    has_res = residual is not None
    if has_res:
        arrays.append(residual)
        in_specs.append(pl.BlockSpec((tm, tn), lambda i, j: (i, j)))

    return pl.pallas_call(
        functools.partial(_matmul_kernel, ln=has_ln, has_res=has_res, gelu=gelu),
        out_shape=jax.ShapeDtypeStruct((M, N), out_dtype),
        grid=(M // tm, N // tn),
        in_specs=in_specs,
        out_specs=pl.BlockSpec((tm, tn), lambda i, j: (i, j)),
        compiler_params=_cp("parallel", "parallel"),
    )(*arrays)


# ----------------------------------------------------------------------------
# 3x3 conv, padding=1, no bias: padded image resident in VMEM, 9-tap accumulate
# ----------------------------------------------------------------------------
def _conv3x3_kernel(x_ref, w_ref, o_ref, *, th, wout):
    i = pl.program_id(0)
    cin = x_ref.shape[-1]
    cout = w_ref.shape[-1]
    acc = jnp.zeros((th * wout, cout), jnp.float32)
    for dy in range(3):
        for dx in range(3):
            win = x_ref[pl.ds(i * th + dy, th), pl.ds(dx, wout), :]
            win = win.reshape(th * wout, cin).astype(jnp.bfloat16)
            acc = acc + jnp.dot(win, w_ref[dy * 3 + dx],
                                preferred_element_type=jnp.float32)
    o_ref[...] = acc.astype(o_ref.dtype)


def conv3x3(x, w9):
    """x: (N, H, W, Cin) bf16; w9: (9, Cin, Cout) bf16 (tap order (ky, kx))."""
    N, H, W, C = x.shape
    Cout = w9.shape[-1]
    if C < 8:
        # Tiny-channel path (only the 16x16, <=2-channel convs of up1): im2col
        # there is negligible; keep the simple matmul formulation.
        xp = jnp.pad(x, ((0, 0), (1, 1), (1, 1), (0, 0)))
        patches = jnp.concatenate(
            [xp[:, dy:dy + H, dx:dx + W, :] for dy in range(3) for dx in range(3)],
            axis=-1)
        y = pallas_matmul(patches.reshape(N * H * W, 9 * C),
                          w9.reshape(9 * C, Cout))
        return y.reshape(N, H, W, Cout)

    th = _pick_tile(H, (32, 16, 8, 4, 2))
    outs = []
    for n in range(N):
        xp = jnp.pad(x[n], ((1, 1), (1, 1), (0, 0)))       # (H+2, W+2, C) bf16
        y = pl.pallas_call(
            functools.partial(_conv3x3_kernel, th=th, wout=W),
            out_shape=jax.ShapeDtypeStruct((H * W, Cout), ACT_DTYPE),
            grid=(H // th,),
            in_specs=[
                pl.BlockSpec((H + 2, W + 2, C), lambda i: (0, 0, 0)),  # resident
                pl.BlockSpec((9, C, Cout), lambda i: (0, 0, 0)),       # resident
            ],
            out_specs=pl.BlockSpec((th * W, Cout), lambda i: (i, 0)),
            compiler_params=_cp("parallel"),
        )(xp, w9)
        outs.append(y.reshape(H, W, Cout))
    return jnp.stack(outs, axis=0)


# ----------------------------------------------------------------------------
# GroupNorm(num_groups=1) fused: stats + normalize + affine (+residual) (+GELU)
# ----------------------------------------------------------------------------
def _gn_kernel(*refs, tr, eps, gelu, has_res, count):
    if has_res:
        x_ref, g_ref, b_ref, res_ref, o_ref, scale_ref, shift_ref = refs
    else:
        x_ref, g_ref, b_ref, o_ref, scale_ref, shift_ref = refs
        res_ref = None
    i = pl.program_id(0)

    @pl.when(i == 0)
    def _():
        nchunks = x_ref.shape[0] // tr

        def body(t, carry):
            s, q = carry
            xb = x_ref[pl.ds(pl.multiple_of(t * tr, 8), tr), :].astype(jnp.float32)
            ps = jnp.sum(xb, axis=0, keepdims=True)
            pq = jnp.sum(xb * xb, axis=0, keepdims=True)
            return (s + jnp.sum(ps, axis=1, keepdims=True),
                    q + jnp.sum(pq, axis=1, keepdims=True))

        zero = jnp.zeros((1, 1), jnp.float32)
        s, q = jax.lax.fori_loop(0, nchunks, body, (zero, zero))
        mu = s / count
        var = jnp.maximum(q / count - mu * mu, 0.0)      # biased var (PyTorch GN)
        rstd = jax.lax.rsqrt(var + eps)
        g = g_ref[...]
        scale_ref[...] = g * rstd
        shift_ref[...] = b_ref[...] - mu * (g * rstd)

    xt = x_ref[pl.ds(pl.multiple_of(i * tr, 8), tr), :].astype(jnp.float32)
    y = xt * scale_ref[...] + shift_ref[...]
    if has_res:
        y = y + res_ref[...].astype(jnp.float32)
    if gelu:
        y = _gelu(y)
    o_ref[...] = y.astype(o_ref.dtype)


def groupnorm1(x, gamma, beta, *, eps=1e-5, gelu=False, residual=None):
    """GroupNorm(1, C) over (H, W, C) per sample, per-channel affine.
    Optional fused `+ residual` then GELU (residual DoubleConv tail)."""
    N, H, W, C = x.shape
    R = H * W
    tr = _pick_tile(R, (2048, 1024, 512, 256, 128, 64, 32, 16, 8))
    g2 = gamma.reshape(1, C).astype(jnp.float32)
    b2 = beta.reshape(1, C).astype(jnp.float32)
    has_res = residual is not None
    outs = []
    for n in range(N):
        arrays = [x[n].reshape(R, C), g2, b2]
        in_specs = [pl.BlockSpec((R, C), lambda i: (0, 0)),   # resident slab
                    pl.BlockSpec((1, C), lambda i: (0, 0)),
                    pl.BlockSpec((1, C), lambda i: (0, 0))]
        if has_res:
            arrays.append(residual[n].reshape(R, C))
            in_specs.append(pl.BlockSpec((tr, C), lambda i: (i, 0)))
        y = pl.pallas_call(
            functools.partial(_gn_kernel, tr=tr, eps=eps, gelu=gelu,
                              has_res=has_res, count=float(R * C)),
            out_shape=jax.ShapeDtypeStruct((R, C), ACT_DTYPE),
            grid=(R // tr,),
            in_specs=in_specs,
            out_specs=pl.BlockSpec((tr, C), lambda i: (i, 0)),
            scratch_shapes=[pltpu.VMEM((1, C), jnp.float32),
                            pltpu.VMEM((1, C), jnp.float32)],
            compiler_params=_cp("arbitrary"),   # stats at step 0 feed later steps
        )(*arrays)
        outs.append(y.reshape(H, W, C))
    return jnp.stack(outs, axis=0)


# ----------------------------------------------------------------------------
# Flash attention (online softmax), both heads per invocation -> (tq, 128) out
# ----------------------------------------------------------------------------
def _flash_kernel(q_ref, k_ref, v_ref, o_ref, m_ref, l_ref, acc_ref, *,
                  nheads, dh, scale):
    j = pl.program_id(1)

    @pl.when(j == 0)
    def _():
        m_ref[...] = jnp.full_like(m_ref, -1e30)
        l_ref[...] = jnp.zeros_like(l_ref)
        acc_ref[...] = jnp.zeros_like(acc_ref)

    for h in range(nheads):
        lo = h * dh
        q = (q_ref[:, lo:lo + dh].astype(jnp.float32) * scale).astype(jnp.bfloat16)
        k = k_ref[:, lo:lo + dh]
        v = v_ref[:, lo:lo + dh]
        s = jax.lax.dot_general(q, k, (((1,), (1,)), ((), ())),
                                preferred_element_type=jnp.float32)     # (tq, tkv)
        m_prev = m_ref[h]
        m_new = jnp.maximum(m_prev, jnp.max(s, axis=-1, keepdims=True))
        alpha = jnp.exp(m_prev - m_new)
        p = jnp.exp(s - m_new)
        l_ref[h] = alpha * l_ref[h] + jnp.sum(p, axis=-1, keepdims=True)
        acc_ref[h] = alpha * acc_ref[h] + jnp.dot(
            p.astype(jnp.bfloat16), v, preferred_element_type=jnp.float32)
        m_ref[h] = m_new

    @pl.when(j == pl.num_programs(1) - 1)
    def _():
        parts = [acc_ref[h] * pl.reciprocal(l_ref[h], approx=True)
                 for h in range(nheads)]
        o_ref[...] = jnp.concatenate(parts, axis=-1).astype(o_ref.dtype)


def flash_attention(qkv, nheads=2):
    """qkv: (S, 3C) bf16 packed [q | k | v]; returns (S, C) bf16."""
    S, threeC = qkv.shape
    C = threeC // 3
    dh = C // nheads
    tq = _pick_tile(S, (512, 256, 128, 64, 32, 16, 8))
    tkv = _pick_tile(S, (1024, 512, 256, 128, 64, 32, 16, 8))
    return pl.pallas_call(
        functools.partial(_flash_kernel, nheads=nheads, dh=dh,
                          scale=1.0 / math.sqrt(dh)),
        out_shape=jax.ShapeDtypeStruct((S, C), ACT_DTYPE),
        grid=(S // tq, S // tkv),
        in_specs=[pl.BlockSpec((tq, C), lambda i, j: (i, 0)),   # q columns
                  pl.BlockSpec((tkv, C), lambda i, j: (j, 1)),  # k columns
                  pl.BlockSpec((tkv, C), lambda i, j: (j, 2))], # v columns
        out_specs=pl.BlockSpec((tq, C), lambda i, j: (i, 0)),
        scratch_shapes=[pltpu.VMEM((nheads, tq, 1), jnp.float32),
                        pltpu.VMEM((nheads, tq, 1), jnp.float32),
                        pltpu.VMEM((nheads, tq, dh), jnp.float32)],
        compiler_params=_cp("parallel", "arbitrary"),
    )(qkv, qkv, qkv)


# ----------------------------------------------------------------------------
# Bilinear 2x upsample (align_corners=True), no HBM transposes
# ----------------------------------------------------------------------------
def _interp_matrix(n_in, n_out):
    src = np.arange(n_out, dtype=np.float64) * (n_in - 1) / (n_out - 1)
    i0 = np.clip(np.floor(src).astype(np.int64), 0, n_in - 1)
    i1 = np.clip(i0 + 1, 0, n_in - 1)
    f = src - i0
    M = np.zeros((n_out, n_in), dtype=np.float32)
    M[np.arange(n_out), i0] += (1.0 - f)
    M[np.arange(n_out), i1] += f
    return M


def _winterp_kernel(x_ref, w_ref, o_ref, *, ti):
    w = w_ref[...]
    for r in range(ti):
        row = x_ref[r]                                    # (W, C)
        o_ref[r] = jnp.dot(w, row,
                           preferred_element_type=jnp.float32).astype(o_ref.dtype)


def upsample_bilinear_2x(x):
    """nn.Upsample(scale_factor=2, mode='bilinear', align_corners=True)."""
    N, H, W, C = x.shape
    ww = jnp.asarray(_interp_matrix(W, 2 * W), ACT_DTYPE)      # (2W, W)
    wh = jnp.asarray(_interp_matrix(H, 2 * H), jnp.float32)    # (2H, H)
    ti = _pick_tile(H, (8, 4, 2))
    outs = []
    for n in range(N):
        # width pass: per-row (2W, W) @ (W, C) inside one kernel, row-tiled
        y1 = pl.pallas_call(
            functools.partial(_winterp_kernel, ti=ti),
            out_shape=jax.ShapeDtypeStruct((H, 2 * W, C), ACT_DTYPE),
            grid=(H // ti,),
            in_specs=[pl.BlockSpec((ti, W, C), lambda i: (i, 0, 0)),
                      pl.BlockSpec((2 * W, W), lambda i: (0, 0))],
            out_specs=pl.BlockSpec((ti, 2 * W, C), lambda i: (i, 0, 0)),
            compiler_params=_cp("parallel"),
        )(x[n], ww)
        # height pass: lane-dense left matmul (2H, H) @ (H, 2W*C)
        y2 = pallas_matmul(wh, y1.reshape(H, 2 * W * C))
        outs.append(y2.reshape(2 * H, 2 * W, C))
    return jnp.stack(outs, axis=0)


# ----------------------------------------------------------------------------
# Module building blocks
# ----------------------------------------------------------------------------
def double_conv(x, p, residual):
    h = conv3x3(x, p["w1"])
    h = groupnorm1(h, p["g1"], p["b1"], gelu=True)            # GN + GELU fused
    h = conv3x3(h, p["w2"])
    if residual:
        # GN + (x residual) + GELU fused in one kernel
        return groupnorm1(h, p["g2"], p["b2"], gelu=True, residual=x)
    return groupnorm1(h, p["g2"], p["b2"], gelu=False)


def up2_block(x, p):
    x = upsample_bilinear_2x(x)
    x = double_conv(x, p["dc1"], residual=True)
    x = double_conv(x, p["dc2"], residual=False)
    return x


def self_attention(x, p, n_heads=2):
    N, H, W, C = x.shape
    S = H * W
    outs = []
    for n in range(N):
        x2d = x[n].reshape(S, C)
        # LayerNorm fused as prologue of the qkv projection
        qkv = pallas_matmul(x2d, p["w_in"], p["b_in"], ln=(p["ln_g"], p["ln_b"]))
        mha = flash_attention(qkv, nheads=n_heads)
        # out-projection with fused "+ x" residual
        av = pallas_matmul(mha, p["w_out"], p["b_out"], residual=x2d)
        # ff: LayerNorm prologue + GELU epilogue, then second linear + residual
        h1 = pallas_matmul(av, p["ff_w1"], p["ff_b1"],
                           ln=(p["ff_ln_g"], p["ff_ln_b"]), gelu=True)
        out = pallas_matmul(h1, p["ff_w2"], p["ff_b2"], residual=av)
        outs.append(out.reshape(H, W, C))
    return jnp.stack(outs, axis=0)


def decoder_forward(x_nchw, params):
    # NCHW at the boundary (PyTorch convention), NHWC/bf16 inside.
    x = jnp.transpose(x_nchw, (0, 2, 3, 1)).astype(ACT_DTYPE)
    x = up2_block(x, params["up1"])
    x = self_attention(x, params["sa4"])
    x = up2_block(x, params["up2"])
    x = self_attention(x, params["sa5"])
    x = up2_block(x, params["up3"])
    x = self_attention(x, params["sa6"])
    x = up2_block(x, params["up4"])
    N, H, W, C = x.shape
    y = pallas_matmul(x.reshape(N * H * W, C), params["outc_w"],
                      params["outc_b"], out_dtype=jnp.float32)   # 1x1 conv
    y = y.reshape(N, H, W, -1)
    return jnp.transpose(y, (0, 3, 1, 2))


# ----------------------------------------------------------------------------
# Deterministic synthetic parameters (PRNGKey(0)); emb_layer unused by forward.
# ----------------------------------------------------------------------------
def _dense(key, shape, fan_in, dtype=ACT_DTYPE):
    return (jax.random.normal(key, shape, jnp.float32) / math.sqrt(fan_in)).astype(dtype)


def init_double_conv(key, cin, cout, mid):
    k1, k2 = jax.random.split(key)
    return {
        "w1": _dense(k1, (9, cin, mid), 9 * cin),
        "g1": jnp.ones((mid,), jnp.float32), "b1": jnp.zeros((mid,), jnp.float32),
        "w2": _dense(k2, (9, mid, cout), 9 * mid),
        "g2": jnp.ones((cout,), jnp.float32), "b2": jnp.zeros((cout,), jnp.float32),
    }


def init_up2(key, cin, cout):
    k1, k2 = jax.random.split(key)
    return {
        "dc1": init_double_conv(k1, cin, cin, cin),                # residual=True
        "dc2": init_double_conv(k2, cin, cout, max(cin // 2, 1)),  # mid = in//2
    }


def init_sa(key, c):
    ks = jax.random.split(key, 4)
    z = lambda n: jnp.zeros((n,), jnp.float32)
    o = lambda n: jnp.ones((n,), jnp.float32)
    return {
        "ln_g": o(c), "ln_b": z(c),
        "w_in": _dense(ks[0], (c, 3 * c), c), "b_in": z(3 * c),
        "w_out": _dense(ks[1], (c, c), c), "b_out": z(c),
        "ff_ln_g": o(c), "ff_ln_b": z(c),
        "ff_w1": _dense(ks[2], (c, c), c), "ff_b1": z(c),
        "ff_w2": _dense(ks[3], (c, c), c), "ff_b2": z(c),
    }


def init_decoder(key, c_in=2, c_out=2):
    ks = jax.random.split(key, 8)
    return {
        "up1": init_up2(ks[0], c_in, 128),
        "sa4": init_sa(ks[1], 128),
        "up2": init_up2(ks[2], 128, 128),
        "sa5": init_sa(ks[3], 128),
        "up3": init_up2(ks[4], 128, 128),
        "sa6": init_sa(ks[5], 128),
        "up4": init_up2(ks[6], 128, 128),
        "outc_w": _dense(ks[7], (128, c_out), 128),
        "outc_b": jnp.zeros((c_out,), jnp.float32),
    }


if __name__ == "__main__":
    key = jax.random.PRNGKey(0)
    pkey, xkey = jax.random.split(key)
    params = init_decoder(pkey, c_in=2, c_out=2)
    # SelfAttention sizes are hardcoded to 16/32/64 in Decoder.__init__, which
    # (via the three intermediate 2x upsamples) implies an 8x8, 2-channel input.
    x = jax.random.normal(xkey, (1, 2, 8, 8), jnp.float32)
    out = decoder_forward(x, params)
    out = jax.block_until_ready(out)
    assert out.shape == (1, 2, 128, 128), out.shape
    assert bool(jnp.isfinite(out).all())
    print("KERNEL_OK")
</pallas_src>

<mosaic_0001>
module attributes {stable_mosaic.version = 11 : i64} {
  func.func @_winterp_kernel(%arg0: i32, %arg1: memref<8x8x2xbf16, #tpu.memory_space<vmem>>, %arg2: memref<16x8xbf16, #tpu.memory_space<vmem>>, %arg3: memref<8x16x2xbf16, #tpu.memory_space<vmem>>) attributes {dimension_semantics = [#tpu.dimension_semantics<parallel>], iteration_bounds = array<i64: 1>, scalar_prefetch = 0 : i64, scratch_operands = 0 : i64, tpu.core_type = #tpu.core_type<tc>, window_params = [{transform_indices = @transform_0, window_bounds = array<i64: 8, 8, 2>}, {pipeline_mode = #tpu.pipeline_mode<synchronous>, transform_indices = @transform_1, window_bounds = array<i64: 16, 8>}, {transform_indices = @transform_2, window_bounds = array<i64: 8, 16, 2>}]} {
    %c0 = arith.constant 0 : index
    %c0_0 = arith.constant 0 : index
    %0 = vector.load %arg2[%c0, %c0_0] : memref<16x8xbf16, #tpu.memory_space<vmem>>, vector<16x8xbf16>
    %c0_1 = arith.constant 0 : index
    %c0_2 = arith.constant 0 : index
    %c0_3 = arith.constant 0 : index
    %1 = vector.load %arg1[%c0_1, %c0_2, %c0_3] : memref<8x8x2xbf16, #tpu.memory_space<vmem>>, vector<1x8x2xbf16>
    %2 = vector.shape_cast %1 : vector<1x8x2xbf16> to vector<8x2xbf16>
    %cst = arith.constant dense<0.000000e+00> : vector<16x2xf32>
    %3 = tpu.matmul %0, %2, %cst {dimension_numbers = #tpu.dot_dimension_numbers<[1], [0], [0], [1], [0, 0, 1, 1], [], []>} : vector<16x8xbf16>, vector<8x2xbf16>, vector<16x2xf32> -> vector<16x2xf32>
    %4 = arith.truncf %3 : vector<16x2xf32> to vector<16x2xbf16>
    %c0_4 = arith.constant 0 : index
    %c0_5 = arith.constant 0 : index
    %c0_6 = arith.constant 0 : index
    %5 = vector.load %arg3[%c0_4, %c0_5, %c0_6] : memref<8x16x2xbf16, #tpu.memory_space<vmem>>, vector<1x16x2xbf16>
    %6 = vector.shape_cast %5 : vector<1x16x2xbf16> to vector<16x2xbf16>
    %7 = vector.shape_cast %4 : vector<16x2xbf16> to vector<1x16x2xbf16>
    tpu.vector_store %arg3[%c0_4, %c0_5, %c0_6], %7 {strides = array<i32>} : memref<8x16x2xbf16, #tpu.memory_space<vmem>>, vector<1x16x2xbf16>,
    %c1 = arith.constant 1 : index
    %c0_7 = arith.constant 0 : index
    %c0_8 = arith.constant 0 : index
    %8 = vector.load %arg1[%c1, %c0_7, %c0_8] : memref<8x8x2xbf16, #tpu.memory_space<vmem>>, vector<1x8x2xbf16>
    %9 = vector.shape_cast %8 : vector<1x8x2xbf16> to vector<8x2xbf16>
    %cst_9 = arith.constant dense<0.000000e+00> : vector<16x2xf32>
    %10 = tpu.matmul %0, %9, %cst_9 {dimension_numbers = #tpu.dot_dimension_numbers<[1], [0], [0], [1], [0, 0, 1, 1], [], []>} : vector<16x8xbf16>, vector<8x2xbf16>, vector<16x2xf32> -> vector<16x2xf32>
    %11 = arith.truncf %10 : vector<16x2xf32> to vector<16x2xbf16>
    %c1_10 = arith.constant 1 : index
    %c0_11 = arith.constant 0 : index
    %c0_12 = arith.constant 0 : index
    %12 = vector.load %arg3[%c1_10, %c0_11, %c0_12] : memref<8x16x2xbf16, #tpu.memory_space<vmem>>, vector<1x16x2xbf16>
    %13 = vector.shape_cast %12 : vector<1x16x2xbf16> to vector<16x2xbf16>
    %14 = vector.shape_cast %11 : vector<16x2xbf16> to vector<1x16x2xbf16>
    tpu.vector_store %arg3[%c1_10, %c0_11, %c0_12], %14 {strides = array<i32>} : memref<8x16x2xbf16, #tpu.memory_space<vmem>>, vector<1x16x2xbf16>,
    %c2 = arith.constant 2 : index
    %c0_13 = arith.constant 0 : index
    %c0_14 = arith.constant 0 : index
    %15 = vector.load %arg1[%c2, %c0_13, %c0_14] : memref<8x8x2xbf16, #tpu.memory_space<vmem>>, vector<1x8x2xbf16>
    %16 = vector.shape_cast %15 : vector<1x8x2xbf16> to vector<8x2xbf16>
    %cst_15 = arith.constant dense<0.000000e+00> : vector<16x2xf32>
    %17 = tpu.matmul %0, %16, %cst_15 {dimension_numbers = #tpu.dot_dimension_numbers<[1], [0], [0], [1], [0, 0, 1, 1], [], []>} : vector<16x8xbf16>, vector<8x2xbf16>, vector<16x2xf32> -> vector<16x2xf32>
    %18 = arith.truncf %17 : vector<16x2xf32> to vector<16x2xbf16>
    %c2_16 = arith.constant 2 : index
    %c0_17 = arith.constant 0 : index
    %c0_18 = arith.constant 0 : index
    %19 = vector.load %arg3[%c2_16, %c0_17, %c0_18] : memref<8x16x2xbf16, #tpu.memory_space<vmem>>, vector<1x16x2xbf16>
    %20 = vector.shape_cast %19 : vector<1x16x2xbf16> to vector<16x2xbf16>
    %21 = vector.shape_cast %18 : vector<16x2xbf16> to vector<1x16x2xbf16>
    tpu.vector_store %arg3[%c2_16, %c0_17, %c0_18], %21 {strides = array<i32>} : memref<8x16x2xbf16, #tpu.memory_space<vmem>>, vector<1x16x2xbf16>,
    %c3 = arith.constant 3 : index
    %c0_19 = arith.constant 0 : index
    %c0_20 = arith.constant 0 : index
    %22 = vector.load %arg1[%c3, %c0_19, %c0_20] : memref<8x8x2xbf16, #tpu.memory_space<vmem>>, vector<1x8x2xbf16>
    %23 = vector.shape_cast %22 : vector<1x8x2xbf16> to vector<8x2xbf16>
    %cst_21 = arith.constant dense<0.000000e+00> : vector<16x2xf32>
    %24 = tpu.matmul %0, %23, %cst_21 {dimension_numbers = #tpu.dot_dimension_numbers<[1], [0], [0], [1], [0, 0, 1, 1], [], []>} : vector<16x8xbf16>, vector<8x2xbf16>, vector<16x2xf32> -> vector<16x2xf32>
    %25 = arith.truncf %24 : vector<16x2xf32> to vector<16x2xbf16>
    %c3_22 = arith.constant 3 : index
    %c0_23 = arith.constant 0 : index
    %c0_24 = arith.constant 0 : index
    %26 = vector.load %arg3[%c3_22, %c0_23, %c0_24] : memref<8x16x2xbf16, #tpu.memory_space<vmem>>, vector<1x16x2xbf16>
    %27 = vector.shape_cast %26 : vector<1x16x2xbf16> to vector<16x2xbf16>
    %28 = vector.shape_cast %25 : vector<16x2xbf16> to vector<1x16x2xbf16>
    tpu.vector_store %arg3[%c3_22, %c0_23, %c0_24], %28 {strides = array<i32>} : memref<8x16x2xbf16, #tpu.memory_space<vmem>>, vector<1x16x2xbf16>,
    %c4 = arith.constant 4 : index
    %c0_25 = arith.constant 0 : index
    %c0_26 = arith.constant 0 : index
    %29 = vector.load %arg1[%c4, %c0_25, %c0_26] : memref<8x8x2xbf16, #tpu.memory_space<vmem>>, vector<1x8x2xbf16>
    %30 = vector.shape_cast %29 : vector<1x8x2xbf16> to vector<8x2xbf16>
    %cst_27 = arith.constant dense<0.000000e+00> : vector<16x2xf32>
    %31 = tpu.matmul %0, %30, %cst_27 {dimension_numbers = #tpu.dot_dimension_numbers<[1], [0], [0], [1], [0, 0, 1, 1], [], []>} : vector<16x8xbf16>, vector<8x2xbf16>, vector<16x2xf32> -> vector<16x2xf32>
    %32 = arith.truncf %31 : vector<16x2xf32> to vector<16x2xbf16>
    %c4_28 = arith.constant 4 : index
    %c0_29 = arith.constant 0 : index
    %c0_30 = arith.constant 0 : index
    %33 = vector.load %arg3[%c4_28, %c0_29, %c0_30] : memref<8x16x2xbf16, #tpu.memory_space<vmem>>, vector<1x16x2xbf16>
    %34 = vector.shape_cast %33 : vector<1x16x2xbf16> to vector<16x2xbf16>
    %35 = vector.shape_cast %32 : vector<16x2xbf16> to vector<1x16x2xbf16>
    tpu.vector_store %arg3[%c4_28, %c0_29, %c0_30], %35 {strides = array<i32>} : memref<8x16x2xbf16, #tpu.memory_space<vmem>>, vector<1x16x2xbf16>,
    %c5 = arith.constant 5 : index
    %c0_31 = arith.constant 0 : index
    %c0_32 = arith.constant 0 : index
    %36 = vector.load %arg1[%c5, %c0_31, %c0_32] : memref<8x8x2xbf16, #tpu.memory_space<vmem>>, vector<1x8x2xbf16>
    %37 = vector.shape_cast %36 : vector<1x8x2xbf16> to vector<8x2xbf16>
    %cst_33 = arith.constant dense<0.000000e+00> : vector<16x2xf32>
    %38 = tpu.matmul %0, %37, %cst_33 {dimension_numbers = #tpu.dot_dimension_numbers<[1], [0], [0], [1], [0, 0, 1, 1], [], []>} : vector<16x8xbf16>, vector<8x2xbf16>, vector<16x2xf32> -> vector<16x2xf32>
    %39 = arith.truncf %38 : vector<16x2xf32> to vector<16x2xbf16>
    %c5_34 = arith.constant 5 : index
    %c0_35 = arith.constant 0 : index
    %c0_36 = arith.constant 0 : index
    %40 = vector.load %arg3[%c5_34, %c0_35, %c0_36] : memref<8x16x2xbf16, #tpu.memory_space<vmem>>, vector<1x16x2xbf16>
    %41 = vector.shape_cast %40 : vector<1x16x2xbf16> to vector<16x2xbf16>
    %42 = vector.shape_cast %39 : vector<16x2xbf16> to vector<1x16x2xbf16>
    tpu.vector_store %arg3[%c5_34, %c0_35, %c0_36], %42 {strides = array<i32>} : memref<8x16x2xbf16, #tpu.memory_space<vmem>>, vector<1x16x2xbf16>,
    %c6 = arith.constant 6 : index
    %c0_37 = arith.constant 0 : index
    %c0_38 = arith.constant 0 : index
    %43 = vector.load %arg1[%c6, %c0_37, %c0_38] : memref<8x8x2xbf16, #tpu.memory_space<vmem>>, vector<1x8x2xbf16>
    %44 = vector.shape_cast %43 : vector<1x8x2xbf16> to vector<8x2xbf16>
    %cst_39 = arith.constant dense<0.000000e+00> : vector<16x2xf32>
    %45 = tpu.matmul %0, %44, %cst_39 {dimension_numbers = #tpu.dot_dimension_numbers<[1], [0], [0], [1], [0, 0, 1, 1], [], []>} : vector<16x8xbf16>, vector<8x2xbf16>, vector<16x2xf32> -> vector<16x2xf32>
    %46 = arith.truncf %45 : vector<16x2xf32> to vector<16x2xbf16>
    %c6_40 = arith.constant 6 : index
    %c0_41 = arith.constant 0 : index
    %c0_42 = arith.constant 0 : index
    %47 = vector.load %arg3[%c6_40, %c0_41, %c0_42] : memref<8x16x2xbf16, #tpu.memory_space<vmem>>, vector<1x16x2xbf16>
    %48 = vector.shape_cast %47 : vector<1x16x2xbf16> to vector<16x2xbf16>
    %49 = vector.shape_cast %46 : vector<16x2xbf16> to vector<1x16x2xbf16>
    tpu.vector_store %arg3[%c6_40, %c0_41, %c0_42], %49 {strides = array<i32>} : memref<8x16x2xbf16, #tpu.memory_space<vmem>>, vector<1x16x2xbf16>,
    %c7 = arith.constant 7 : index
    %c0_43 = arith.constant 0 : index
    %c0_44 = arith.constant 0 : index
    %50 = vector.load %arg1[%c7, %c0_43, %c0_44] : memref<8x8x2xbf16, #tpu.memory_space<vmem>>, vector<1x8x2xbf16>
    %51 = vector.shape_cast %50 : vector<1x8x2xbf16> to vector<8x2xbf16>
    %cst_45 = arith.constant dense<0.000000e+00> : vector<16x2xf32>
    %52 = tpu.matmul %0, %51, %cst_45 {dimension_numbers = #tpu.dot_dimension_numbers<[1], [0], [0], [1], [0, 0, 1, 1], [], []>} : vector<16x8xbf16>, vector<8x2xbf16>, vector<16x2xf32> -> vector<16x2xf32>
    %53 = arith.truncf %52 : vector<16x2xf32> to vector<16x2xbf16>
    %c7_46 = arith.constant 7 : index
    %c0_47 = arith.constant 0 : index
    %c0_48 = arith.constant 0 : index
    %54 = vector.load %arg3[%c7_46, %c0_47, %c0_48] : memref<8x16x2xbf16, #tpu.memory_space<vmem>>, vector<1x16x2xbf16>
    %55 = vector.shape_cast %54 : vector<1x16x2xbf16> to vector<16x2xbf16>
    %56 = vector.shape_cast %53 : vector<16x2xbf16> to vector<1x16x2xbf16>
    tpu.vector_store %arg3[%c7_46, %c0_47, %c0_48], %56 {strides = array<i32>} : memref<8x16x2xbf16, #tpu.memory_space<vmem>>, vector<1x16x2xbf16>,
    return
  }
  func.func @transform_0(%arg0: i32) -> (i32, i32, i32) {
    %c0_i32 = arith.constant 0 : i32
    %c0_i32_0 = arith.constant 0 : i32
    %c0_i32_1 = arith.constant 0 : i32
    return %arg0, %c0_i32, %c0_i32_0 : i32, i32, i32
  }
  func.func @transform_1(%arg0: i32) -> (i32, i32) {
    %c0_i32 = arith.constant 0 : i32
    %c0_i32_0 = arith.constant 0 : i32
    %c0_i32_1 = arith.constant 0 : i32
    return %c0_i32, %c0_i32_0 : i32, i32
  }
  func.func @transform_2(%arg0: i32) -> (i32, i32, i32) {
    %c0_i32 = arith.constant 0 : i32
    %c0_i32_0 = arith.constant 0 : i32
    %c0_i32_1 = arith.constant 0 : i32
    return %arg0, %c0_i32, %c0_i32_0 : i32, i32, i32
  }
}

</mosaic_0001>

<bundles_post_ra>
// kernel: tpu_custom_call.1
= control target key start
LH: loop header
LB: loop body
LE: loop exit
PB: predicated region body
PF: predicated region fallthrough
CT: control target
= control target key end

     0   :  { %vm24_vm0 = vcmask 1043456   ;;  %v612_v0 = vmov 0.0   ;;  %vm613_vm1 = vmmov 0   ;;  %vm20_vm2 = vcmask 64512   ;;  %s744_s0 = inlined_call_operand.vmem [shape: bf16[8,8,2], index: 0, kind: input, shape index: {}]   ;;  %s745_s1 = inlined_call_operand.vmem [shape: bf16[16,8], index: 1, kind: input, shape index: {}]   ;;  %s746_s2 = inlined_call_operand.vmem [shape: bf16[8,16,2], index: 2, kind: output, shape index: {}]  }
   0x1   :  { %561 = vmatprep.subr.bf16.mxu0 %v612_v0  ;;  %567 = vmatprep.subr.bf16.mxu1 %v612_v0  ;;  %v14_v1 = vld [vmem:[%s744_s0] sm:$0xf]  ;;  %v487_v2 = vld [vmem:[%s744_s0 + $0x4] sm:$0xf]  ;;  %v493_v6 = vld [vmem:[%s744_s0 + $0x8] sm:$0xf] }
   0x2   :  { %v26_v3 = vsel %vm24_vm0, %v14_v1, 0  ;;  %v83_v4 = vsel %vm24_vm0, %v487_v2, 0  ;;  %563 = vmatprep.mubr.msk.bf16.mxu0 %vm613_vm1, %v612_v0  ;;  %569 = vmatprep.mubr.msk.bf16.mxu1 %vm613_vm1, %v612_v0  ;;  %v611_v5 = vld [vmem:[%s745_s1] sm:$0xff]   ;;  %v499_v7 = vld [vmem:[%s744_s0 + $0xc] sm:$0xf]  ;;  %v140_v8 = vsel %vm24_vm0, %v493_v6, 0 }
   0x3   :  { %562 = vmatpush3.bf16.msra.mxu0 %v26_v3  ;;  %568 = vmatpush3.bf16.msra.mxu1 %v83_v4  ;;  %v197_v9 = vsel %vm24_vm0, %v499_v7, 0  ;;  %v505_v10 = vld [vmem:[%s744_s0 + $0x10] sm:$0xf]  ;;  %v511_v11 = vld [vmem:[%s744_s0 + $0x14] sm:$0xf]  ;;  %vm77_vm3 = vcmask 11264  }
   0x4   :  { %573 = vmatprep.subr.bf16.mxu0 %v612_v0  ;;  %579 = vmatprep.subr.bf16.mxu1 %v612_v0  ;;  %v254_v12 = vsel %vm24_vm0, %v505_v10, 0  ;;  %v311_v13 = vsel %vm24_vm0, %v511_v11, 0  ;;  %v517_v14 = vld [vmem:[%s744_s0 + $0x18] sm:$0xf]  ;;  %v523_v15 = vld [vmem:[%s744_s0 + $0x1c] sm:$0xf] }
   0x5   :  { %v368_v16 = vsel %vm24_vm0, %v517_v14, 0  ;;  %v425_v17 = vsel %vm24_vm0, %v523_v15, 0 }
   0x6   :  { %564 = vmatmul.mubr.msk.bf16.vlgmr.msra.gmra.mxu0 %vm20_vm2, %v611_v5  ;;  %570 = vmatmul.mubr.msk.bf16.vlgmr.msra.gmra.mxu1 %vm20_vm2, %v611_v5 }
   0x7   :  { %574 = vmatpush3.bf16.msra.mxu0 %v140_v8  ;;  %580 = vmatpush3.bf16.msra.mxu1 %v197_v9 }
   0x8   :  { %575 = vmatprep.mubr.msk.bf16.mxu0 %vm613_vm1, %v612_v0  ;;  %581 = vmatprep.mubr.msk.bf16.mxu1 %vm613_vm1, %v612_v0 }
   0x9   :  { %585 = vmatprep.subr.bf16.mxu0 %v612_v0  ;;  %591 = vmatprep.subr.bf16.mxu1 %v612_v0 }
   0xe   :  { %576 = vmatmul.mubr.msk.bf16.vlgmr.msra.gmra.mxu0 %vm20_vm2, %v611_v5  ;;  %582 = vmatmul.mubr.msk.bf16.vlgmr.msra.gmra.mxu1 %vm20_vm2, %v611_v5 }
   0xf   :  { %586 = vmatpush3.bf16.msra.mxu0 %v254_v12  ;;  %592 = vmatpush3.bf16.msra.mxu1 %v311_v13 }
  0x10   :  { %587 = vmatprep.mubr.msk.bf16.mxu0 %vm613_vm1, %v612_v0  ;;  %593 = vmatprep.mubr.msk.bf16.mxu1 %vm613_vm1, %v612_v0 }
  0x11   :  { %597 = vmatprep.subr.bf16.mxu0 %v612_v0  ;;  %603 = vmatprep.subr.bf16.mxu1 %v612_v0 }
  0x16   :  { %588 = vmatmul.mubr.msk.bf16.vlgmr.msra.gmra.mxu0 %vm20_vm2, %v611_v5  ;;  %594 = vmatmul.mubr.msk.bf16.vlgmr.msra.gmra.mxu1 %vm20_vm2, %v611_v5 }
  0x17   :  { %598 = vmatpush3.bf16.msra.mxu0 %v368_v16  ;;  %604 = vmatpush3.bf16.msra.mxu1 %v425_v17 }
  0x18   :  { %599 = vmatprep.mubr.msk.bf16.mxu0 %vm613_vm1, %v612_v0  ;;  %605 = vmatprep.mubr.msk.bf16.mxu1 %vm613_vm1, %v612_v0 }
  0x1e   :  { %600 = vmatmul.mubr.msk.bf16.vlgmr.msra.gmra.mxu0 %vm20_vm2, %v611_v5  ;;  %606 = vmatmul.mubr.msk.bf16.vlgmr.msra.gmra.mxu1 %vm20_vm2, %v611_v5 }
  0xc6   :  { %v62_v18 = vpop.f32.mrf.mxu0  ;;  %v119_v19 = vpop.f32.mrf.mxu1 }
  0xc7   :  { %v529_v20 = vpack.c.bf16 %v62_v18, %v62_v18  ;;  %v531_v21 = vpack.c.bf16 %v119_v19, %v119_v19 }
  0xc8   :  { %v565_v22 = vpop.f32.mrf.mxu0  ;;  %v571_v23 = vpop.f32.mrf.mxu1 }
  0xc9   :  { %78 = vst.msk [vmem:[%s746_s2] sm:$0xf] %vm77_vm3, %v529_v20  ;;  %491 = vst.msk [vmem:[%s746_s2 + $0x8] sm:$0xf] %vm77_vm3, %v531_v21 }
  0xca   :  { %v65_v24 = vpop.f32.mrf.mxu0  ;;  %v122_v25 = vpop.f32.mrf.mxu1 }
  0xcb   :  { %v530_v26 = vpack.c.bf16 %v65_v24, %v65_v24  ;;  %v532_v27 = vpack.c.bf16 %v122_v25, %v122_v25 }
  0xcc   :  { %v566_v28 = vpop.f32.mrf.mxu0  ;;  %v572_v29 = vpop.f32.mrf.mxu1 }
  0xcd   :  { %79 = vst.msk [vmem:[%s746_s2 + $0x4] sm:$0xf] %vm77_vm3, %v530_v26  ;;  %492 = vst.msk [vmem:[%s746_s2 + $0xc] sm:$0xf] %vm77_vm3, %v532_v27 }
  0xce   :  { %v176_v30 = vpop.f32.mrf.mxu0  ;;  %v233_v31 = vpop.f32.mrf.mxu1 }
  0xcf   :  { %v533_v32 = vpack.c.bf16 %v176_v30, %v176_v30  ;;  %v535_v33 = vpack.c.bf16 %v233_v31, %v233_v31 }
  0xd0   :  { %v577_v34 = vpop.f32.mrf.mxu0  ;;  %v583_v35 = vpop.f32.mrf.mxu1 }
  0xd1   :  { %497 = vst.msk [vmem:[%s746_s2 + $0x10] sm:$0xf] %vm77_vm3, %v533_v32  ;;  %503 = vst.msk [vmem:[%s746_s2 + $0x18] sm:$0xf] %vm77_vm3, %v535_v33 }
  0xd2   :  { %v179_v36 = vpop.f32.mrf.mxu0  ;;  %v236_v37 = vpop.f32.mrf.mxu1 }
  0xd3   :  { %v534_v38 = vpack.c.bf16 %v179_v36, %v179_v36  ;;  %v536_v39 = vpack.c.bf16 %v236_v37, %v236_v37 }
  0xd4   :  { %v578_v40 = vpop.f32.mrf.mxu0  ;;  %v584_v41 = vpop.f32.mrf.mxu1 }
  0xd5   :  { %498 = vst.msk [vmem:[%s746_s2 + $0x14] sm:$0xf] %vm77_vm3, %v534_v38  ;;  %504 = vst.msk [vmem:[%s746_s2 + $0x1c] sm:$0xf] %vm77_vm3, %v536_v39 }
  0xd6   :  { %v290_v42 = vpop.f32.mrf.mxu0  ;;  %v347_v43 = vpop.f32.mrf.mxu1 }
  0xd7   :  { %v537_v44 = vpack.c.bf16 %v290_v42, %v290_v42  ;;  %v539_v45 = vpack.c.bf16 %v347_v43, %v347_v43 }
  0xd8   :  { %v589_v46 = vpop.f32.mrf.mxu0  ;;  %v595_v47 = vpop.f32.mrf.mxu1 }
  0xd9   :  { %509 = vst.msk [vmem:[%s746_s2 + $0x20] sm:$0xf] %vm77_vm3, %v537_v44  ;;  %515 = vst.msk [vmem:[%s746_s2 + $0x28] sm:$0xf] %vm77_vm3, %v539_v45 }
  0xda   :  { %v293_v48 = vpop.f32.mrf.mxu0  ;;  %v350_v49 = vpop.f32.mrf.mxu1 }
  0xdb   :  { %v538_v50 = vpack.c.bf16 %v293_v48, %v293_v48  ;;  %v540_v51 = vpack.c.bf16 %v350_v49, %v350_v49 }
  0xdc   :  { %v590_v52 = vpop.f32.mrf.mxu0  ;;  %v596_v53 = vpop.f32.mrf.mxu1 }
  0xdd   :  { %510 = vst.msk [vmem:[%s746_s2 + $0x24] sm:$0xf] %vm77_vm3, %v538_v50  ;;  %516 = vst.msk [vmem:[%s746_s2 + $0x2c] sm:$0xf] %vm77_vm3, %v540_v51 }
  0xde   :  { %v404_v54 = vpop.f32.mrf.mxu0  ;;  %v461_v55 = vpop.f32.mrf.mxu1 }
  0xdf   :  { %v541_v56 = vpack.c.bf16 %v404_v54, %v404_v54  ;;  %v543_v57 = vpack.c.bf16 %v461_v55, %v461_v55 }
  0xe0   :  { %v601_v58 = vpop.f32.mrf.mxu0  ;;  %v607_v59 = vpop.f32.mrf.mxu1 }
  0xe1   :  { %521 = vst.msk [vmem:[%s746_s2 + $0x30] sm:$0xf] %vm77_vm3, %v541_v56  ;;  %527 = vst.msk [vmem:[%s746_s2 + $0x38] sm:$0xf] %vm77_vm3, %v543_v57 }
  0xe2   :  { %v407_v60 = vpop.f32.mrf.mxu0  ;;  %v464_v61 = vpop.f32.mrf.mxu1 }
  0xe3   :  { %v542_v62 = vpack.c.bf16 %v407_v60, %v407_v60  ;;  %v544_v63 = vpack.c.bf16 %v464_v61, %v464_v61 }
  0xe4   :  { %v602_v0 = vpop.f32.mrf.mxu0  ;;  %v608_v1 = vpop.f32.mrf.mxu1 }
  0xe5   :  { %522 = vst.msk [vmem:[%s746_s2 + $0x34] sm:$0xf] %vm77_vm3, %v542_v62  ;;  %528 = vst.msk [vmem:[%s746_s2 + $0x3c] sm:$0xf] %vm77_vm3, %v544_v63 }

</bundles_post_ra>
